<compile_context>
chip_gen: v7x
topology: tpu7x:2x2x1
jax: 0.10.0
libtpu: 0.0.40
codegen_flags: <defaults>
</compile_context>

<pallas_src>
import jax
import jax.numpy as jnp
from jax.experimental import pallas as pl
from jax.experimental.pallas import tpu as pltpu

IN_F = 3
H1 = 5
H2 = 7
OUT_F = H1 + H2

# Packed parameter layout inside the single 1-D SMEM buffer
# (flattened to 1-D to avoid SMEM 2-D padding).
_W1_OFF = 0                    # w1[k, n] at _W1_OFF + k * H1 + n   (15 floats)
_B1_OFF = _W1_OFF + IN_F * H1  # b1[n]                              (5 floats)
_W2_OFF = _B1_OFF + H1         # w2[k, n] at _W2_OFF + k * H2 + n   (35 floats)
_B2_OFF = _W2_OFF + H1 * H2    # b2[n]                              (7 floats)
_NPARAMS = _B2_OFF + H2        # 62 floats total


def _fused_kernel(params_ref, x_ref, o_ref):
    """Batch-last fused MLP: x (3, tb) -> tanh([y1; y2]) (12, tb).

    Weights are read as scalars from SMEM and applied as scalar-splat FMAs
    on the lane-dense batch vectors (K=3 and K=5 are far too small for the
    MXU; the dependent push/pop round trip would also serialize the layers).
    """
    x = x_ref[...].astype(jnp.float32)                 # (3, tb)
    xr = [x[k:k + 1, :] for k in range(IN_F)]          # 3 x (1, tb) sublane rows

    # Layer 1: 5 output rows, 3 FMAs each.
    y1 = []
    for n in range(H1):
        acc = params_ref[_B1_OFF + n] + params_ref[_W1_OFF + n] * xr[0]
        for k in range(1, IN_F):
            acc = acc + params_ref[_W1_OFF + k * H1 + n] * xr[k]
        y1.append(acc)

    # Layer 2 consumes layer-1 rows: 7 output rows, 5 FMAs each.
    y2 = []
    for n in range(H2):
        acc = params_ref[_B2_OFF + n] + params_ref[_W2_OFF + n] * y1[0]
        for k in range(1, H1):
            acc = acc + params_ref[_W2_OFF + k * H2 + n] * y1[k]
        y2.append(acc)

    # Assemble (12, tb) along the sublane axis and store once, full-lane.
    out = jnp.concatenate(y1 + y2, axis=0)             # (12, tb)
    o_ref[...] = jnp.tanh(out).astype(o_ref.dtype)


def _round_up(v, m):
    return ((v + m - 1) // m) * m


def model_forward(x, w1, b1, w2, b2, *, tb_max=32768):
    """Fused forward. Weights stored transposed vs. PyTorch: W1 (3,5), W2 (5,7).

    x: (B, 3) float32  ->  returns (B, 12) float32.
    """
    B = x.shape[0]

    # Pack all parameters into one small 1-D f32 buffer that lives in SMEM.
    params = jnp.concatenate(
        [w1.reshape(-1), b1.reshape(-1), w2.reshape(-1), b2.reshape(-1)]
    ).astype(jnp.float32)
    assert params.shape[0] == _NPARAMS

    # Wrapper-side transpose to the lane-dense batch-last layout (3, B).
    xt = jnp.transpose(x)

    if B <= 128:
        # Single full block: block dims equal array dims, so the (8,128)
        # divisibility rule is satisfied even for tiny B.
        tb = B
    else:
        # Lane-dense tile: multiple of 128. Capped so the grid has at least
        # 2 steps (both v7x TensorCores get work via "parallel" semantics).
        # VMEM: x tile pads to (8, tb) f32 and out tile to (16, tb) f32, so
        # double-buffered cost is ~192 B/lane -> ~6 MiB at tb=32768, well
        # inside v5e's 16 MiB / v6e-v7x's 32 MiB default scoped VMEM.
        tb = min(tb_max, _round_up(pl.cdiv(B, 2), 128))

    grid = (pl.cdiv(B, tb),)   # ragged final block: reads garbage in the
                               # padding lanes, writes there are masked.

    out_t = pl.pallas_call(
        _fused_kernel,
        out_shape=jax.ShapeDtypeStruct((OUT_F, B), jnp.float32),
        grid=grid,
        in_specs=[
            # All 62 parameter scalars resident in SMEM (no per-step DMA).
            pl.BlockSpec(memory_space=pltpu.MemorySpace.SMEM),
            # Lane-dense x tile (3, tb), batch on the lane axis.
            pl.BlockSpec((IN_F, tb), lambda i: (0, i)),
        ],
        # Lane-dense output tile (12, tb): single unmasked full-lane store.
        out_specs=pl.BlockSpec((OUT_F, tb), lambda i: (0, i)),
        compiler_params=pltpu.CompilerParams(
            dimension_semantics=("parallel",),
            vmem_limit_bytes=32 * 1024 * 1024,
        ),
    )(params, xt)

    # Back to the PyTorch-facing (B, 12) layout.
    return jnp.transpose(out_t)


def _init_params(key):
    # Deterministic init mimicking nn.Linear's uniform(-1/sqrt(fan_in), ...).
    k1, k2, k3, k4 = jax.random.split(key, 4)
    lim1 = 1.0 / (IN_F ** 0.5)
    lim2 = 1.0 / (H1 ** 0.5)
    w1 = jax.random.uniform(k1, (IN_F, H1), jnp.float32, -lim1, lim1)
    b1 = jax.random.uniform(k2, (H1,), jnp.float32, -lim1, lim1)
    w2 = jax.random.uniform(k3, (H1, H2), jnp.float32, -lim2, lim2)
    b2 = jax.random.uniform(k4, (H2,), jnp.float32, -lim2, lim2)
    return w1, b1, w2, b2


def _reference(x, w1, b1, w2, b2):
    y1 = x @ w1 + b1
    y2 = y1 @ w2 + b2
    return jnp.tanh(jnp.concatenate([y1, y2], axis=1))


if __name__ == "__main__":
    key = jax.random.PRNGKey(0)
    k_x, k_p = jax.random.split(key)
    w1, b1, w2, b2 = _init_params(k_p)

    # Small path (single full block, batch=2 like the original spec).
    x = jax.random.normal(k_x, (2, IN_F), jnp.float32)
    out = jax.block_until_ready(model_forward(x, w1, b1, w2, b2))
    ref = _reference(x, w1, b1, w2, b2)
    assert out.shape == (2, OUT_F)
    assert jnp.allclose(out, ref, atol=1e-5, rtol=1e-5)

    # Batched-grid path (B > 128, ragged last block, 2 grid steps).
    xb = jax.random.normal(k_x, (1030, IN_F), jnp.float32)
    outb = jax.block_until_ready(model_forward(xb, w1, b1, w2, b2))
    refb = _reference(xb, w1, b1, w2, b2)
    assert outb.shape == (1030, OUT_F)
    assert jnp.allclose(outb, refb, atol=1e-5, rtol=1e-5)

    print("KERNEL_OK")
</pallas_src>

<mosaic_0001>
module attributes {stable_mosaic.version = 11 : i64} {
  func.func @_fused_kernel(%arg0: i32, %arg1: memref<62xf32, #tpu.memory_space<smem>>, %arg2: memref<3x2xf32, #tpu.memory_space<vmem>>, %arg3: memref<12x2xf32, #tpu.memory_space<vmem>>) attributes {dimension_semantics = [#tpu.dimension_semantics<parallel>], iteration_bounds = array<i64: 1>, scalar_prefetch = 0 : i64, scratch_operands = 0 : i64, tpu.core_type = #tpu.core_type<tc>, window_params = [{transform_indices = @transform_0, window_bounds = array<i64: 62>}, {transform_indices = @transform_1, window_bounds = array<i64: 3, 2>}, {transform_indices = @transform_2, window_bounds = array<i64: 12, 2>}]} {
    %c0 = arith.constant 0 : index
    %c0_0 = arith.constant 0 : index
    %0 = vector.load %arg2[%c0, %c0_0] : memref<3x2xf32, #tpu.memory_space<vmem>>, vector<3x2xf32>
    %1 = vector.extract_strided_slice %0 {offsets = [0, 0], sizes = [1, 2], strides = [1, 1]} : vector<3x2xf32> to vector<1x2xf32>
    %2 = vector.extract_strided_slice %0 {offsets = [1, 0], sizes = [1, 2], strides = [1, 1]} : vector<3x2xf32> to vector<1x2xf32>
    %3 = vector.extract_strided_slice %0 {offsets = [2, 0], sizes = [1, 2], strides = [1, 1]} : vector<3x2xf32> to vector<1x2xf32>
    %c15 = arith.constant 15 : index
    %4 = memref.load %arg1[%c15] : memref<62xf32, #tpu.memory_space<smem>>
    %c0_1 = arith.constant 0 : index
    %5 = memref.load %arg1[%c0_1] : memref<62xf32, #tpu.memory_space<smem>>
    %6 = vector.broadcast %5 : f32 to vector<1x2xf32>
    %7 = arith.mulf %6, %1 : vector<1x2xf32>
    %8 = vector.broadcast %4 : f32 to vector<1x2xf32>
    %9 = arith.addf %8, %7 : vector<1x2xf32>
    %c5 = arith.constant 5 : index
    %10 = memref.load %arg1[%c5] : memref<62xf32, #tpu.memory_space<smem>>
    %11 = vector.broadcast %10 : f32 to vector<1x2xf32>
    %12 = arith.mulf %11, %2 : vector<1x2xf32>
    %13 = arith.addf %9, %12 : vector<1x2xf32>
    %c10 = arith.constant 10 : index
    %14 = memref.load %arg1[%c10] : memref<62xf32, #tpu.memory_space<smem>>
    %15 = vector.broadcast %14 : f32 to vector<1x2xf32>
    %16 = arith.mulf %15, %3 : vector<1x2xf32>
    %17 = arith.addf %13, %16 : vector<1x2xf32>
    %c16 = arith.constant 16 : index
    %18 = memref.load %arg1[%c16] : memref<62xf32, #tpu.memory_space<smem>>
    %c1 = arith.constant 1 : index
    %19 = memref.load %arg1[%c1] : memref<62xf32, #tpu.memory_space<smem>>
    %20 = vector.broadcast %19 : f32 to vector<1x2xf32>
    %21 = arith.mulf %20, %1 : vector<1x2xf32>
    %22 = vector.broadcast %18 : f32 to vector<1x2xf32>
    %23 = arith.addf %22, %21 : vector<1x2xf32>
    %c6 = arith.constant 6 : index
    %24 = memref.load %arg1[%c6] : memref<62xf32, #tpu.memory_space<smem>>
    %25 = vector.broadcast %24 : f32 to vector<1x2xf32>
    %26 = arith.mulf %25, %2 : vector<1x2xf32>
    %27 = arith.addf %23, %26 : vector<1x2xf32>
    %c11 = arith.constant 11 : index
    %28 = memref.load %arg1[%c11] : memref<62xf32, #tpu.memory_space<smem>>
    %29 = vector.broadcast %28 : f32 to vector<1x2xf32>
    %30 = arith.mulf %29, %3 : vector<1x2xf32>
    %31 = arith.addf %27, %30 : vector<1x2xf32>
    %c17 = arith.constant 17 : index
    %32 = memref.load %arg1[%c17] : memref<62xf32, #tpu.memory_space<smem>>
    %c2 = arith.constant 2 : index
    %33 = memref.load %arg1[%c2] : memref<62xf32, #tpu.memory_space<smem>>
    %34 = vector.broadcast %33 : f32 to vector<1x2xf32>
    %35 = arith.mulf %34, %1 : vector<1x2xf32>
    %36 = vector.broadcast %32 : f32 to vector<1x2xf32>
    %37 = arith.addf %36, %35 : vector<1x2xf32>
    %c7 = arith.constant 7 : index
    %38 = memref.load %arg1[%c7] : memref<62xf32, #tpu.memory_space<smem>>
    %39 = vector.broadcast %38 : f32 to vector<1x2xf32>
    %40 = arith.mulf %39, %2 : vector<1x2xf32>
    %41 = arith.addf %37, %40 : vector<1x2xf32>
    %c12 = arith.constant 12 : index
    %42 = memref.load %arg1[%c12] : memref<62xf32, #tpu.memory_space<smem>>
    %43 = vector.broadcast %42 : f32 to vector<1x2xf32>
    %44 = arith.mulf %43, %3 : vector<1x2xf32>
    %45 = arith.addf %41, %44 : vector<1x2xf32>
    %c18 = arith.constant 18 : index
    %46 = memref.load %arg1[%c18] : memref<62xf32, #tpu.memory_space<smem>>
    %c3 = arith.constant 3 : index
    %47 = memref.load %arg1[%c3] : memref<62xf32, #tpu.memory_space<smem>>
    %48 = vector.broadcast %47 : f32 to vector<1x2xf32>
    %49 = arith.mulf %48, %1 : vector<1x2xf32>
    %50 = vector.broadcast %46 : f32 to vector<1x2xf32>
    %51 = arith.addf %50, %49 : vector<1x2xf32>
    %c8 = arith.constant 8 : index
    %52 = memref.load %arg1[%c8] : memref<62xf32, #tpu.memory_space<smem>>
    %53 = vector.broadcast %52 : f32 to vector<1x2xf32>
    %54 = arith.mulf %53, %2 : vector<1x2xf32>
    %55 = arith.addf %51, %54 : vector<1x2xf32>
    %c13 = arith.constant 13 : index
    %56 = memref.load %arg1[%c13] : memref<62xf32, #tpu.memory_space<smem>>
    %57 = vector.broadcast %56 : f32 to vector<1x2xf32>
    %58 = arith.mulf %57, %3 : vector<1x2xf32>
    %59 = arith.addf %55, %58 : vector<1x2xf32>
    %c19 = arith.constant 19 : index
    %60 = memref.load %arg1[%c19] : memref<62xf32, #tpu.memory_space<smem>>
    %c4 = arith.constant 4 : index
    %61 = memref.load %arg1[%c4] : memref<62xf32, #tpu.memory_space<smem>>
    %62 = vector.broadcast %61 : f32 to vector<1x2xf32>
    %63 = arith.mulf %62, %1 : vector<1x2xf32>
    %64 = vector.broadcast %60 : f32 to vector<1x2xf32>
    %65 = arith.addf %64, %63 : vector<1x2xf32>
    %c9 = arith.constant 9 : index
    %66 = memref.load %arg1[%c9] : memref<62xf32, #tpu.memory_space<smem>>
    %67 = vector.broadcast %66 : f32 to vector<1x2xf32>
    %68 = arith.mulf %67, %2 : vector<1x2xf32>
    %69 = arith.addf %65, %68 : vector<1x2xf32>
    %c14 = arith.constant 14 : index
    %70 = memref.load %arg1[%c14] : memref<62xf32, #tpu.memory_space<smem>>
    %71 = vector.broadcast %70 : f32 to vector<1x2xf32>
    %72 = arith.mulf %71, %3 : vector<1x2xf32>
    %73 = arith.addf %69, %72 : vector<1x2xf32>
    %c55 = arith.constant 55 : index
    %74 = memref.load %arg1[%c55] : memref<62xf32, #tpu.memory_space<smem>>
    %c20 = arith.constant 20 : index
    %75 = memref.load %arg1[%c20] : memref<62xf32, #tpu.memory_space<smem>>
    %76 = vector.broadcast %75 : f32 to vector<1x2xf32>
    %77 = arith.mulf %76, %17 : vector<1x2xf32>
    %78 = vector.broadcast %74 : f32 to vector<1x2xf32>
    %79 = arith.addf %78, %77 : vector<1x2xf32>
    %c27 = arith.constant 27 : index
    %80 = memref.load %arg1[%c27] : memref<62xf32, #tpu.memory_space<smem>>
    %81 = vector.broadcast %80 : f32 to vector<1x2xf32>
    %82 = arith.mulf %81, %31 : vector<1x2xf32>
    %83 = arith.addf %79, %82 : vector<1x2xf32>
    %c34 = arith.constant 34 : index
    %84 = memref.load %arg1[%c34] : memref<62xf32, #tpu.memory_space<smem>>
    %85 = vector.broadcast %84 : f32 to vector<1x2xf32>
    %86 = arith.mulf %85, %45 : vector<1x2xf32>
    %87 = arith.addf %83, %86 : vector<1x2xf32>
    %c41 = arith.constant 41 : index
    %88 = memref.load %arg1[%c41] : memref<62xf32, #tpu.memory_space<smem>>
    %89 = vector.broadcast %88 : f32 to vector<1x2xf32>
    %90 = arith.mulf %89, %59 : vector<1x2xf32>
    %91 = arith.addf %87, %90 : vector<1x2xf32>
    %c48 = arith.constant 48 : index
    %92 = memref.load %arg1[%c48] : memref<62xf32, #tpu.memory_space<smem>>
    %93 = vector.broadcast %92 : f32 to vector<1x2xf32>
    %94 = arith.mulf %93, %73 : vector<1x2xf32>
    %95 = arith.addf %91, %94 : vector<1x2xf32>
    %c56 = arith.constant 56 : index
    %96 = memref.load %arg1[%c56] : memref<62xf32, #tpu.memory_space<smem>>
    %c21 = arith.constant 21 : index
    %97 = memref.load %arg1[%c21] : memref<62xf32, #tpu.memory_space<smem>>
    %98 = vector.broadcast %97 : f32 to vector<1x2xf32>
    %99 = arith.mulf %98, %17 : vector<1x2xf32>
    %100 = vector.broadcast %96 : f32 to vector<1x2xf32>
    %101 = arith.addf %100, %99 : vector<1x2xf32>
    %c28 = arith.constant 28 : index
    %102 = memref.load %arg1[%c28] : memref<62xf32, #tpu.memory_space<smem>>
    %103 = vector.broadcast %102 : f32 to vector<1x2xf32>
    %104 = arith.mulf %103, %31 : vector<1x2xf32>
    %105 = arith.addf %101, %104 : vector<1x2xf32>
    %c35 = arith.constant 35 : index
    %106 = memref.load %arg1[%c35] : memref<62xf32, #tpu.memory_space<smem>>
    %107 = vector.broadcast %106 : f32 to vector<1x2xf32>
    %108 = arith.mulf %107, %45 : vector<1x2xf32>
    %109 = arith.addf %105, %108 : vector<1x2xf32>
    %c42 = arith.constant 42 : index
    %110 = memref.load %arg1[%c42] : memref<62xf32, #tpu.memory_space<smem>>
    %111 = vector.broadcast %110 : f32 to vector<1x2xf32>
    %112 = arith.mulf %111, %59 : vector<1x2xf32>
    %113 = arith.addf %109, %112 : vector<1x2xf32>
    %c49 = arith.constant 49 : index
    %114 = memref.load %arg1[%c49] : memref<62xf32, #tpu.memory_space<smem>>
    %115 = vector.broadcast %114 : f32 to vector<1x2xf32>
    %116 = arith.mulf %115, %73 : vector<1x2xf32>
    %117 = arith.addf %113, %116 : vector<1x2xf32>
    %c57 = arith.constant 57 : index
    %118 = memref.load %arg1[%c57] : memref<62xf32, #tpu.memory_space<smem>>
    %c22 = arith.constant 22 : index
    %119 = memref.load %arg1[%c22] : memref<62xf32, #tpu.memory_space<smem>>
    %120 = vector.broadcast %119 : f32 to vector<1x2xf32>
    %121 = arith.mulf %120, %17 : vector<1x2xf32>
    %122 = vector.broadcast %118 : f32 to vector<1x2xf32>
    %123 = arith.addf %122, %121 : vector<1x2xf32>
    %c29 = arith.constant 29 : index
    %124 = memref.load %arg1[%c29] : memref<62xf32, #tpu.memory_space<smem>>
    %125 = vector.broadcast %124 : f32 to vector<1x2xf32>
    %126 = arith.mulf %125, %31 : vector<1x2xf32>
    %127 = arith.addf %123, %126 : vector<1x2xf32>
    %c36 = arith.constant 36 : index
    %128 = memref.load %arg1[%c36] : memref<62xf32, #tpu.memory_space<smem>>
    %129 = vector.broadcast %128 : f32 to vector<1x2xf32>
    %130 = arith.mulf %129, %45 : vector<1x2xf32>
    %131 = arith.addf %127, %130 : vector<1x2xf32>
    %c43 = arith.constant 43 : index
    %132 = memref.load %arg1[%c43] : memref<62xf32, #tpu.memory_space<smem>>
    %133 = vector.broadcast %132 : f32 to vector<1x2xf32>
    %134 = arith.mulf %133, %59 : vector<1x2xf32>
    %135 = arith.addf %131, %134 : vector<1x2xf32>
    %c50 = arith.constant 50 : index
    %136 = memref.load %arg1[%c50] : memref<62xf32, #tpu.memory_space<smem>>
    %137 = vector.broadcast %136 : f32 to vector<1x2xf32>
    %138 = arith.mulf %137, %73 : vector<1x2xf32>
    %139 = arith.addf %135, %138 : vector<1x2xf32>
    %c58 = arith.constant 58 : index
    %140 = memref.load %arg1[%c58] : memref<62xf32, #tpu.memory_space<smem>>
    %c23 = arith.constant 23 : index
    %141 = memref.load %arg1[%c23] : memref<62xf32, #tpu.memory_space<smem>>
    %142 = vector.broadcast %141 : f32 to vector<1x2xf32>
    %143 = arith.mulf %142, %17 : vector<1x2xf32>
    %144 = vector.broadcast %140 : f32 to vector<1x2xf32>
    %145 = arith.addf %144, %143 : vector<1x2xf32>
    %c30 = arith.constant 30 : index
    %146 = memref.load %arg1[%c30] : memref<62xf32, #tpu.memory_space<smem>>
    %147 = vector.broadcast %146 : f32 to vector<1x2xf32>
    %148 = arith.mulf %147, %31 : vector<1x2xf32>
    %149 = arith.addf %145, %148 : vector<1x2xf32>
    %c37 = arith.constant 37 : index
    %150 = memref.load %arg1[%c37] : memref<62xf32, #tpu.memory_space<smem>>
    %151 = vector.broadcast %150 : f32 to vector<1x2xf32>
    %152 = arith.mulf %151, %45 : vector<1x2xf32>
    %153 = arith.addf %149, %152 : vector<1x2xf32>
    %c44 = arith.constant 44 : index
    %154 = memref.load %arg1[%c44] : memref<62xf32, #tpu.memory_space<smem>>
    %155 = vector.broadcast %154 : f32 to vector<1x2xf32>
    %156 = arith.mulf %155, %59 : vector<1x2xf32>
    %157 = arith.addf %153, %156 : vector<1x2xf32>
    %c51 = arith.constant 51 : index
    %158 = memref.load %arg1[%c51] : memref<62xf32, #tpu.memory_space<smem>>
    %159 = vector.broadcast %158 : f32 to vector<1x2xf32>
    %160 = arith.mulf %159, %73 : vector<1x2xf32>
    %161 = arith.addf %157, %160 : vector<1x2xf32>
    %c59 = arith.constant 59 : index
    %162 = memref.load %arg1[%c59] : memref<62xf32, #tpu.memory_space<smem>>
    %c24 = arith.constant 24 : index
    %163 = memref.load %arg1[%c24] : memref<62xf32, #tpu.memory_space<smem>>
    %164 = vector.broadcast %163 : f32 to vector<1x2xf32>
    %165 = arith.mulf %164, %17 : vector<1x2xf32>
    %166 = vector.broadcast %162 : f32 to vector<1x2xf32>
    %167 = arith.addf %166, %165 : vector<1x2xf32>
    %c31 = arith.constant 31 : index
    %168 = memref.load %arg1[%c31] : memref<62xf32, #tpu.memory_space<smem>>
    %169 = vector.broadcast %168 : f32 to vector<1x2xf32>
    %170 = arith.mulf %169, %31 : vector<1x2xf32>
    %171 = arith.addf %167, %170 : vector<1x2xf32>
    %c38 = arith.constant 38 : index
    %172 = memref.load %arg1[%c38] : memref<62xf32, #tpu.memory_space<smem>>
    %173 = vector.broadcast %172 : f32 to vector<1x2xf32>
    %174 = arith.mulf %173, %45 : vector<1x2xf32>
    %175 = arith.addf %171, %174 : vector<1x2xf32>
    %c45 = arith.constant 45 : index
    %176 = memref.load %arg1[%c45] : memref<62xf32, #tpu.memory_space<smem>>
    %177 = vector.broadcast %176 : f32 to vector<1x2xf32>
    %178 = arith.mulf %177, %59 : vector<1x2xf32>
    %179 = arith.addf %175, %178 : vector<1x2xf32>
    %c52 = arith.constant 52 : index
    %180 = memref.load %arg1[%c52] : memref<62xf32, #tpu.memory_space<smem>>
    %181 = vector.broadcast %180 : f32 to vector<1x2xf32>
    %182 = arith.mulf %181, %73 : vector<1x2xf32>
    %183 = arith.addf %179, %182 : vector<1x2xf32>
    %c60 = arith.constant 60 : index
    %184 = memref.load %arg1[%c60] : memref<62xf32, #tpu.memory_space<smem>>
    %c25 = arith.constant 25 : index
    %185 = memref.load %arg1[%c25] : memref<62xf32, #tpu.memory_space<smem>>
    %186 = vector.broadcast %185 : f32 to vector<1x2xf32>
    %187 = arith.mulf %186, %17 : vector<1x2xf32>
    %188 = vector.broadcast %184 : f32 to vector<1x2xf32>
    %189 = arith.addf %188, %187 : vector<1x2xf32>
    %c32 = arith.constant 32 : index
    %190 = memref.load %arg1[%c32] : memref<62xf32, #tpu.memory_space<smem>>
    %191 = vector.broadcast %190 : f32 to vector<1x2xf32>
    %192 = arith.mulf %191, %31 : vector<1x2xf32>
    %193 = arith.addf %189, %192 : vector<1x2xf32>
    %c39 = arith.constant 39 : index
    %194 = memref.load %arg1[%c39] : memref<62xf32, #tpu.memory_space<smem>>
    %195 = vector.broadcast %194 : f32 to vector<1x2xf32>
    %196 = arith.mulf %195, %45 : vector<1x2xf32>
    %197 = arith.addf %193, %196 : vector<1x2xf32>
    %c46 = arith.constant 46 : index
    %198 = memref.load %arg1[%c46] : memref<62xf32, #tpu.memory_space<smem>>
    %199 = vector.broadcast %198 : f32 to vector<1x2xf32>
    %200 = arith.mulf %199, %59 : vector<1x2xf32>
    %201 = arith.addf %197, %200 : vector<1x2xf32>
    %c53 = arith.constant 53 : index
    %202 = memref.load %arg1[%c53] : memref<62xf32, #tpu.memory_space<smem>>
    %203 = vector.broadcast %202 : f32 to vector<1x2xf32>
    %204 = arith.mulf %203, %73 : vector<1x2xf32>
    %205 = arith.addf %201, %204 : vector<1x2xf32>
    %c61 = arith.constant 61 : index
    %206 = memref.load %arg1[%c61] : memref<62xf32, #tpu.memory_space<smem>>
    %c26 = arith.constant 26 : index
    %207 = memref.load %arg1[%c26] : memref<62xf32, #tpu.memory_space<smem>>
    %208 = vector.broadcast %207 : f32 to vector<1x2xf32>
    %209 = arith.mulf %208, %17 : vector<1x2xf32>
    %210 = vector.broadcast %206 : f32 to vector<1x2xf32>
    %211 = arith.addf %210, %209 : vector<1x2xf32>
    %c33 = arith.constant 33 : index
    %212 = memref.load %arg1[%c33] : memref<62xf32, #tpu.memory_space<smem>>
    %213 = vector.broadcast %212 : f32 to vector<1x2xf32>
    %214 = arith.mulf %213, %31 : vector<1x2xf32>
    %215 = arith.addf %211, %214 : vector<1x2xf32>
    %c40 = arith.constant 40 : index
    %216 = memref.load %arg1[%c40] : memref<62xf32, #tpu.memory_space<smem>>
    %217 = vector.broadcast %216 : f32 to vector<1x2xf32>
    %218 = arith.mulf %217, %45 : vector<1x2xf32>
    %219 = arith.addf %215, %218 : vector<1x2xf32>
    %c47 = arith.constant 47 : index
    %220 = memref.load %arg1[%c47] : memref<62xf32, #tpu.memory_space<smem>>
    %221 = vector.broadcast %220 : f32 to vector<1x2xf32>
    %222 = arith.mulf %221, %59 : vector<1x2xf32>
    %223 = arith.addf %219, %222 : vector<1x2xf32>
    %c54 = arith.constant 54 : index
    %224 = memref.load %arg1[%c54] : memref<62xf32, #tpu.memory_space<smem>>
    %225 = vector.broadcast %224 : f32 to vector<1x2xf32>
    %226 = arith.mulf %225, %73 : vector<1x2xf32>
    %227 = arith.addf %223, %226 : vector<1x2xf32>
    %228 = tpu.concatenate %17, %31, %45, %59, %73, %95, %117, %139, %161, %183, %205, %227 in 0 : vector<1x2xf32>, vector<1x2xf32>, vector<1x2xf32>, vector<1x2xf32>, vector<1x2xf32>, vector<1x2xf32>, vector<1x2xf32>, vector<1x2xf32>, vector<1x2xf32>, vector<1x2xf32>, vector<1x2xf32>, vector<1x2xf32> -> vector<12x2xf32>
    %229 = math.tanh %228 : vector<12x2xf32>
    %c0_2 = arith.constant 0 : index
    %c0_3 = arith.constant 0 : index
    %230 = vector.load %arg3[%c0_2, %c0_3] : memref<12x2xf32, #tpu.memory_space<vmem>>, vector<12x2xf32>
    tpu.vector_store %arg3[%c0_2, %c0_3], %229 {strides = array<i32>} : memref<12x2xf32, #tpu.memory_space<vmem>>, vector<12x2xf32>,
    return
  }
  func.func @transform_0(%arg0: i32) -> i32 {
    %c0_i32 = arith.constant 0 : i32
    %c0_i32_0 = arith.constant 0 : i32
    return %c0_i32 : i32
  }
  func.func @transform_1(%arg0: i32) -> (i32, i32) {
    %c0_i32 = arith.constant 0 : i32
    %c0_i32_0 = arith.constant 0 : i32
    return %c0_i32, %arg0 : i32, i32
  }
  func.func @transform_2(%arg0: i32) -> (i32, i32) {
    %c0_i32 = arith.constant 0 : i32
    %c0_i32_0 = arith.constant 0 : i32
    return %c0_i32, %arg0 : i32, i32
  }
}

</mosaic_0001>

<bundles_post_ra>
// kernel: tpu_custom_call.1
= control target key start
LH: loop header
LB: loop body
LE: loop exit
PB: predicated region body
PF: predicated region fallthrough
CT: control target
= control target key end

     0   :  { %7 = vsyncpa [#allocation3], 0  ;;  %s691_s0 = inlined_call_operand.vmem [shape: f32[62], index: 0, kind: input, shape index: {}]   ;;  %s692_s1 = inlined_call_operand.vmem [shape: f32[3,2], index: 1, kind: input, shape index: {}]   ;;  %s693_s2 = inlined_call_operand.vmem [shape: f32[12,2], index: 2, kind: output, shape index: {}]  }
   0x1   :  { %s14_s11 = sshll.u32 %s691_s0, 4  ;;  %s15_s11 = int_to_ptr.vmem [resolvable:$true] %s14_s11 }
   0x2   :  { %s403_s12 = scalar_lea.vmem %s15_s11, 16  ;;  %p408_p1 = scmp.lt.s32.totalorder %s15_s11, %s15_s11 }
   0x3   :  { %p404_p0 = scmp.ne.s32.totalorder %s15_s11, %s403_s12  ;;  %p409_p2 = scmp.lt.s32.totalorder %s403_s12, %s403_s12 }
   0x5   :  { %p410_p3 = por %p409_p2, %p408_p1 }
   0x7   :  { %p411_p4 = pnand %p410_p3, %p404_p0 }
   0x9   :  { %414 = shalt.err (!%p411_p4)
}
   0xa   :  { %s417_s13 = smov [#allocation2]  }
   0xb   :  { %17 = dma.vmem_to_smem %s15_s11, 16, %s417_s13, [#allocation3]  }
   0xc   :  { %415 = dma.done.wait [#allocation3], 16  }
   0xd   :  { %416 = vsyncadd [#allocation3], 4294967280 }
   0xe   :  { %23 = sfence }
   0xf   :  { %s337_s14 = sld [smem:[#allocation2 + $0xf]]  ;;  %s26_s15 = sld [smem:[#allocation2]]  ;;  %v441_v0 = vld [vmem:[%s692_s1] sm:$0x7]  ;;  %vm309_vm0 = vcmask 1040384   ;;  %vm311_vm1 = vcmask 1041408  }
  0x10   :  { %s338_s16 = sld [smem:[#allocation2 + $0x5]]  ;;  %s339_s17 = sld [smem:[#allocation2 + $0xa]]  ;;  %vm313_vm2 = vcmask 1042432   ;;  %vm315_vm3 = vcmask 1043456   ;;  %vm317_vm4 = vcmask 1044480   ;;  %vm319_vm5 = vcmask 1045504  }
  0x11   :  { %s436_s18 = sld [smem:[#allocation2 + $0x10]]  ;;  %s341_s0 = sld [smem:[#allocation2 + $0x1]]  ;;  %vm321_vm6 = vcmask 1046528   ;;  %vm328_vm7 = vcmask 15360   ;;  %vm330_vm8 = vcmask 11264  }
  0x12   :  { %s342_s19 = sld [smem:[#allocation2 + $0x6]]  ;;  %s343_s20 = sld [smem:[#allocation2 + $0xb]] }
  0x13   :  { %s443_s23 = sld [smem:[#allocation2 + $0x11]]  ;;  %s445_s24 = sld [smem:[#allocation2 + $0x2]] }
  0x14   :  { %s447_s25 = sld [smem:[#allocation2 + $0x7]]  ;;  %s449_s26 = sld [smem:[#allocation2 + $0xc]] }
  0x15   :  { %v27_v1 = vstv %s26_s15  ;;  %v29_v2 = vstv %s337_s14  ;;  %s451_s27 = sld [smem:[#allocation2 + $0x12]]  ;;  %s453_s28 = sld [smem:[#allocation2 + $0x3]] }
  0x16   :  { %v28_v3 = vmul.f32 %v27_v1, %v441_v0  ;;  %v32_v4 = vstv %s338_s16  ;;  %v39_v5 = vstv %s339_s17  ;;  %s456_s1 = sld [smem:[#allocation2 + $0x8]]  ;;  %s458_s29 = sld [smem:[#allocation2 + $0xd]] }
  0x17   :  { %v33_v6 = vmul.f32 %v32_v4, %v441_v0  ;;  %v40_v7 = vmul.f32 %v39_v5, %v441_v0  ;;  %v47_v8 = vstv %s341_s0  ;;  %v49_v9 = vstv %s436_s18  ;;  %s464_s30 = sld [smem:[#allocation2 + $0x13]]  ;;  %s466_s3 = sld [smem:[#allocation2 + $0x4]] }
  0x18   :  { %v30_v10 = vadd.f32 %v29_v2, %v28_v3  ;;  %v48_v11 = vmul.f32 %v47_v8, %v441_v0  ;;  %v52_v12 = vstv %s342_s19  ;;  %v59_v13 = vstv %s343_s20  ;;  %s470_s4 = sld [smem:[#allocation2 + $0x9]]  ;;  %s475_s5 = sld [smem:[#allocation2 + $0xe]] }
  0x19   :  { %v35_v14 = vrot.slane %v33_v6, 1  ;;  %v42_v15 = vrot.slane %v40_v7, 2  ;;  %v53_v16 = vmul.f32 %v52_v12, %v441_v0  ;;  %v60_v17 = vmul.f32 %v59_v13, %v441_v0  ;;  %s477_s6 = sld [smem:[#allocation2 + $0x14]]  ;;  %s480_s7 = sld [smem:[#allocation2 + $0x37]] }
  0x1a   :  { %v50_v18 = vadd.f32 %v49_v9, %v48_v11  ;;  %v67_v19 = vstv %s445_s24  ;;  %v69_v20 = vstv %s443_s23  ;;  %v72_v21 = vstv %s447_s25  ;;  %s486_s8 = sld [smem:[#allocation2 + $0x1b]]  ;;  %s488_s9 = sld [smem:[#allocation2 + $0x22]] }
  0x1b   :  { %v37_v22 = vadd.f32 %v35_v14, %v30_v10  ;;  %v55_v23 = vrot.slane %v53_v16, 1  ;;  %v62_v24 = vrot.slane %v60_v17, 2  ;;  %v68_v25 = vmul.f32 %v67_v19, %v441_v0  ;;  %s496_s10 = sld [smem:[#allocation2 + $0x29]]  ;;  %s498_s11 = sld [smem:[#allocation2 + $0x30]] }
  0x1c   :  { %v73_v26 = vmul.f32 %v72_v21, %v441_v0  ;;  %v79_v27 = vstv %s449_s26  ;;  %v87_v28 = vstv %s453_s28  ;;  %v89_v29 = vstv %s451_s27  ;;  %s504_s12 = sld [smem:[#allocation2 + $0x38]]  ;;  %s506_s13 = sld [smem:[#allocation2 + $0x15]] }
  0x1d   :  { %v490_v30 = vadd.f32 %v42_v15, %v37_v22  ;;  %v57_v31 = vadd.f32 %v55_v23, %v50_v18  ;;  %v70_v32 = vadd.f32 %v69_v20, %v68_v25  ;;  %v80_v33 = vmul.f32 %v79_v27, %v441_v0  ;;  %s510_s14 = sld [smem:[#allocation2 + $0x1c]]  ;;  %s512_s15 = sld [smem:[#allocation2 + $0x23]] }
  0x1e   :  { %v75_v34 = vrot.slane %v73_v26, 1  ;;  %v88_v35 = vmul.f32 %v87_v28, %v441_v0  ;;  %v92_v36 = vstv %s456_s1  ;;  %v99_v37 = vstv %s458_s29  ;;  %s516_s16 = sld [smem:[#allocation2 + $0x2a]]  ;;  %s523_s17 = sld [smem:[#allocation2 + $0x31]] }
  0x1f   :  { %v500_v38 = vadd.f32 %v62_v24, %v57_v31  ;;  %v82_v39 = vrot.slane %v80_v33, 2  ;;  %v93_v40 = vmul.f32 %v92_v36, %v441_v0  ;;  %v100_v41 = vmul.f32 %v99_v37, %v441_v0  ;;  %s527_s18 = sld [smem:[#allocation2 + $0x39]]  ;;  %s529_s0 = sld [smem:[#allocation2 + $0x16]] }
  0x20   :  { %v77_v42 = vadd.f32 %v75_v34, %v70_v32  ;;  %v90_v43 = vadd.f32 %v89_v29, %v88_v35  ;;  %v107_v44 = vstv %s466_s3  ;;  %v109_v45 = vstv %s464_s30  ;;  %s534_s19 = sld [smem:[#allocation2 + $0x1d]]  ;;  %s536_s20 = sld [smem:[#allocation2 + $0x24]] }
  0x21   :  { %v95_v46 = vrot.slane %v93_v40, 1  ;;  %v102_v47 = vrot.slane %v100_v41, 2  ;;  %v108_v48 = vmul.f32 %v107_v44, %v441_v0  ;;  %v112_v49 = vstv %s470_s4  ;;  %s541_s21 = sld [smem:[#allocation2 + $0x2b]]  ;;  %s545_s22 = sld [smem:[#allocation2 + $0x32]] }
  0x22   :  { %v518_v50 = vadd.f32 %v82_v39, %v77_v42  ;;  %v113_v51 = vmul.f32 %v112_v49, %v441_v0  ;;  %v119_v52 = vstv %s475_s5  ;;  %v127_v53 = vstv %s477_s6  ;;  %s547_s23 = sld [smem:[#allocation2 + $0x3a]]  ;;  %s552_s24 = sld [smem:[#allocation2 + $0x17]] }
  0x23   :  { %v97_v54 = vadd.f32 %v95_v46, %v90_v43  ;;  %v110_v55 = vadd.f32 %v109_v45, %v108_v48  ;;  %v120_v56 = vmul.f32 %v119_v52, %v441_v0  ;;  %v128_v57 = vmul.f32 %v127_v53, %v490_v30  ;;  %s554_s25 = sld [smem:[#allocation2 + $0x1e]]  ;;  %s564_s26 = sld [smem:[#allocation2 + $0x25]] }
  0x24   :  { %v115_v58 = vrot.slane %v113_v51, 1  ;;  %v129_v59 = vstv %s480_s7  ;;  %v132_v60 = vstv %s486_s8  ;;  %v136_v61 = vstv %s488_s9  ;;  %s566_s27 = sld [smem:[#allocation2 + $0x18]]  ;;  %s570_s28 = sld [smem:[#allocation2 + $0x2c]] }
  0x25   :  { %v538_v62 = vadd.f32 %v102_v47, %v97_v54  ;;  %v122_v63 = vrot.slane %v120_v56, 2  ;;  %v130_v0 = vadd.f32 %v129_v59, %v128_v57  ;;  %v133_v1 = vmul.f32 %v132_v60, %v500_v38  ;;  %s576_s1 = sld [smem:[#allocation2 + $0x33]]  ;;  %s583_s30 = sld [smem:[#allocation2 + $0x1f]] }
  0x26   :  { %v117_v2 = vadd.f32 %v115_v58, %v110_v55  ;;  %v137_v3 = vmul.f32 %v136_v61, %v518_v50  ;;  %v140_v4 = vstv %s496_s10  ;;  %v144_v6 = vstv %s498_s11  ;;  %s578_s29 = sld [smem:[#allocation2 + $0x3b]]  ;;  %s585_s3 = sld [smem:[#allocation2 + $0x26]] }
  0x27   :  { %v134_v5 = vadd.f32 %v133_v1, %v130_v0  ;;  %v149_v7 = vstv %s506_s13  ;;  %v151_v8 = vstv %s504_s12  ;;  %v154_v11 = vstv %s510_s14  ;;  %s590_s4 = sld [smem:[#allocation2 + $0x2d]]  ;;  %s594_s5 = sld [smem:[#allocation2 + $0x34]] }
  0x28   :  { %v556_v9 = vadd.f32 %v122_v63, %v117_v2  ;;  %v150_v10 = vmul.f32 %v149_v7, %v490_v30  ;;  %v158_v12 = vstv %s512_s15  ;;  %v141_v14 = vmul.f32 %v140_v4, %v538_v62  ;;  %s600_s6 = sld [smem:[#allocation2 + $0x3c]]  ;;  %s602_s7 = sld [smem:[#allocation2 + $0x19]] }
  0x29   :  { %v138_v13 = vadd.f32 %v137_v3, %v134_v5  ;;  %v155_v15 = vmul.f32 %v154_v11, %v500_v38  ;;  %v162_v16 = vstv %s516_s16  ;;  %v159_v18 = vmul.f32 %v158_v12, %v518_v50  ;;  %s606_s8 = sld [smem:[#allocation2 + $0x20]]  ;;  %s608_s9 = sld [smem:[#allocation2 + $0x27]] }
  0x2a   :  { %v152_v17 = vadd.f32 %v151_v8, %v150_v10  ;;  %v166_v19 = vstv %s523_s17  ;;  %v145_v20 = vmul.f32 %v144_v6, %v556_v9  ;;  %v163_v21 = vmul.f32 %v162_v16, %v538_v62  ;;  %s615_s10 = sld [smem:[#allocation2 + $0x2e]]  ;;  %s619_s11 = sld [smem:[#allocation2 + $0x35]] }
  0x2b   :  { %v171_v22 = vstv %s529_s0  ;;  %v173_v23 = vstv %s527_s18  ;;  %v176_v26 = vstv %s534_s19  ;;  %v180_v27 = vstv %s536_s20  ;;  %s626_s12 = sld [smem:[#allocation2 + $0x3d]]  ;;  %s628_s13 = sld [smem:[#allocation2 + $0x1a]] }
  0x2c   :  { %v156_v24 = vadd.f32 %v155_v15, %v152_v17  ;;  %v172_v25 = vmul.f32 %v171_v22, %v490_v30  ;;  %v142_v28 = vadd.f32 %v141_v14, %v138_v13  ;;  %v167_v29 = vmul.f32 %v166_v19, %v556_v9  ;;  %s632_s14 = sld [smem:[#allocation2 + $0x21]]  ;;  %s634_s15 = sld [smem:[#allocation2 + $0x28]] }
  0x2d   :  { %v177_v31 = vmul.f32 %v176_v26, %v500_v38  ;;  %v184_v32 = vstv %s541_s21  ;;  %v181_v35 = vmul.f32 %v180_v27, %v518_v50  ;;  %v188_v36 = vstv %s545_s22  ;;  %s639_s16 = sld [smem:[#allocation2 + $0x2f]]  ;;  %s644_s17 = sld [smem:[#allocation2 + $0x36]] }
  0x2e   :  { %v160_v33 = vadd.f32 %v159_v18, %v156_v24  ;;  %v174_v34 = vadd.f32 %v173_v23, %v172_v25  ;;  %v185_v37 = vmul.f32 %v184_v32, %v538_v62  ;;  %v193_v39 = vstv %s552_s24 }
  0x2f   :  { %v195_v40 = vstv %s547_s23  ;;  %v198_v41 = vstv %s554_s25  ;;  %v194_v44 = vmul.f32 %v193_v39, %v490_v30  ;;  %v610_v46 = vadd.f32 %v145_v20, %v142_v28 }
  0x30   :  { %v164_v42 = vadd.f32 %v163_v21, %v160_v33  ;;  %v178_v43 = vadd.f32 %v177_v31, %v174_v34  ;;  %v199_v45 = vmul.f32 %v198_v41, %v500_v38  ;;  %v189_v47 = vmul.f32 %v188_v36, %v556_v9 }
  0x31   :  { %v202_v48 = vstv %s564_s26  ;;  %v215_v49 = vstv %s566_s27  ;;  %v196_v52 = vadd.f32 %v195_v40, %v194_v44  ;;  %v206_v54 = vstv %s570_s28 }
  0x32   :  { %v182_v51 = vadd.f32 %v181_v35, %v178_v43  ;;  %v203_v53 = vmul.f32 %v202_v48, %v518_v50  ;;  %v621_v55 = vadd.f32 %v167_v29, %v164_v42  ;;  %v210_v56 = vstv %s576_s1 }
  0x33   :  { %v216_v57 = vmul.f32 %v215_v49, %v490_v30  ;;  %v217_v58 = vstv %s578_s29  ;;  %v200_v60 = vadd.f32 %v199_v45, %v196_v52  ;;  %v220_v61 = vstv %s583_s30 }
  0x34   :  { %v186_v59 = vadd.f32 %v185_v37, %v182_v51  ;;  %v224_v63 = vstv %s585_s3  ;;  %v221_v1 = vmul.f32 %v220_v61, %v500_v38  ;;  %v228_v3 = vstv %s590_s4 }
  0x35   :  { %v218_v0 = vadd.f32 %v217_v58, %v216_v57  ;;  %v225_v2 = vmul.f32 %v224_v63, %v518_v50  ;;  %v204_v4 = vadd.f32 %v203_v53, %v200_v60  ;;  %v207_v5 = vmul.f32 %v206_v54, %v538_v62 }
  0x36   :  { %v211_v6 = vmul.f32 %v210_v56, %v556_v9  ;;  %v232_v7 = vstv %s594_s5  ;;  %v229_v10 = vmul.f32 %v228_v3, %v538_v62  ;;  %v237_v11 = vstv %s602_s7 }
  0x37   :  { %v222_v8 = vadd.f32 %v221_v1, %v218_v0  ;;  %v239_v12 = vstv %s600_s6  ;;  %v190_v13 = vadd.f32 %v189_v47, %v186_v59  ;;  %v238_v14 = vmul.f32 %v237_v11, %v490_v30 }
  0x38   :  { %v242_v15 = vstv %s606_s8  ;;  %v246_v16 = vstv %s608_s9  ;;  %v233_v18 = vmul.f32 %v232_v7, %v556_v9  ;;  %v250_v20 = vstv %s615_s10 }
  0x39   :  { %v226_v17 = vadd.f32 %v225_v2, %v222_v8  ;;  %v243_v19 = vmul.f32 %v242_v15, %v500_v38  ;;  %v208_v21 = vadd.f32 %v207_v5, %v204_v4  ;;  %v240_v22 = vadd.f32 %v239_v12, %v238_v14 }
  0x3a   :  { %v247_v23 = vmul.f32 %v246_v16, %v518_v50  ;;  %v254_v24 = vstv %s619_s11  ;;  %v251_v26 = vmul.f32 %v250_v20, %v538_v62  ;;  %v259_v27 = vstv %s628_s13 }
  0x3b   :  { %v230_v25 = vadd.f32 %v229_v10, %v226_v17  ;;  %v261_v28 = vstv %s626_s12  ;;  %v244_v29 = vadd.f32 %v243_v19, %v240_v22  ;;  %v260_v31 = vmul.f32 %v259_v27, %v490_v30 }
  0x3c   :  { %v264_v32 = vstv %s632_s14  ;;  %v268_v33 = vstv %s634_s15  ;;  %v255_v35 = vmul.f32 %v254_v24, %v556_v9  ;;  %v272_v37 = vstv %s639_s16 }
  0x3d   :  { %v234_v34 = vadd.f32 %v233_v18, %v230_v25  ;;  %v265_v36 = vmul.f32 %v264_v32, %v500_v38  ;;  %v248_v39 = vadd.f32 %v247_v23, %v244_v29  ;;  %v262_v40 = vadd.f32 %v261_v28, %v260_v31 }
  0x3e   :  { %v269_v41 = vmul.f32 %v268_v33, %v518_v50  ;;  %v276_v42 = vstv %s644_s17  ;;  %v212_v43 = vadd.f32 %v211_v6, %v208_v21  ;;  %v280_v44 = vrot.slane %v500_v38, 7 }
  0x3f   :  { %v283_v45 = vrot.slane %v518_v50, 6  ;;  %v286_v47 = vrot.slane %v538_v62, 5  ;;  %v252_v48 = vadd.f32 %v251_v26, %v248_v39  ;;  %v266_v49 = vadd.f32 %v265_v36, %v262_v40 }
  0x40   :  { %v273_v51 = vmul.f32 %v272_v37, %v538_v62  ;;  %v289_v52 = vrot.slane %v556_v9, 4  ;;  %v277_v53 = vmul.f32 %v276_v42, %v556_v9  ;;  %v292_v54 = vrot.slane %v610_v46, 3 }
  0x41   :  { %v301_v56 = vrot.slane %v234_v34, 7  ;;  %v310_v57 = vsel %vm309_vm0, %v490_v30, %v280_v44  ;;  %v256_v58 = vadd.f32 %v255_v35, %v252_v48  ;;  %v270_v38 = vadd.f32 %v269_v41, %v266_v49 }
  0x42   :  { %v295_v50 = vrot.slane %v621_v55, 2  ;;  %v312_v59 = vsel %vm311_vm1, %v310_v57, %v283_v45  ;;  %v298_v60 = vrot.slane %v190_v13, 1 }
  0x43   :  { %v314_v61 = vsel %vm313_vm2, %v312_v59, %v286_v47  ;;  %v274_v62 = vadd.f32 %v273_v51, %v270_v38  ;;  %v304_v63 = vrot.slane %v256_v58, 6  ;;  %v323_v46 = vsel %vm309_vm0, %v212_v43, %v301_v56 }
  0x44   :  { %v316_v9 = vsel %vm315_vm3, %v314_v61, %v289_v52 }
  0x45   :  { %v318_v0 = vsel %vm317_vm4, %v316_v9, %v292_v54  ;;  %v278_v30 = vadd.f32 %v277_v53, %v274_v62  ;;  %v324_v55 = vsel %vm311_vm1, %v323_v46, %v304_v63 }
  0x46   :  { %v320_v1 = vsel %vm319_vm5, %v318_v0, %v295_v50 }
  0x47   :  { %v322_v2 = vsel %vm321_vm6, %v320_v1, %v298_v60  ;;  %v307_v3 = vrot.slane %v278_v30, 5 }
  0x48   :  { %399 = vtanh.f32 %v322_v2 }
  0x49   :  { %v325_v4 = vsel %vm313_vm2, %v324_v55, %v307_v3 }
  0x4a   :  { %401 = vtanh.f32 %v325_v4 }
  0x52   :  { %v400_v5 = vpop.eup %399 }
  0x53   :  { %329 = vst.msk [vmem:[%s693_s2] sm:$0xff] %vm328_vm7, %v400_v5 }
  0x54   :  { %v402_v6 = vpop.eup %401 }
  0x55   :  { %331 = vst.msk [vmem:[%s693_s2 + $0x8] sm:$0xf] %vm330_vm8, %v402_v6 }
  0x56   :  { %336 = vsyncpa [#allocation3], 1 }

</bundles_post_ra>
